<compile_context>
chip_gen: v5e
topology: v5e:2x2
jax: 0.10.0
libtpu: 0.0.40
codegen_flags: <defaults>
</compile_context>

<pallas_src>
import math
import functools

import jax
import jax.numpy as jnp
import numpy as np
from jax.experimental import pallas as pl
from jax.experimental.pallas import tpu as pltpu

LANES = 128
SUBLANES = 8


def _round_up(x, m):
    return -(-x // m) * m


def _single_tc_chip():
    """Best-effort detection of single-TensorCore chips (v5e / v6e)."""
    try:
        kind = jax.devices()[0].device_kind.lower()
    except Exception:
        return False
    return any(tag in kind for tag in
               ("v5e", "v5 lite", "v5lite", "v6e", "v6 lite", "v6lite"))


def _disloss_kernel(mu_ref, std_ref, tl_ref, out_ref, *,
                    block_rows, tiles_per_core, rows_full, rem_lanes):
    core = pl.program_id(0)
    step = pl.program_id(1)

    # Output block doubles as the per-core accumulator (resident across the
    # inner "arbitrary" axis).
    @pl.when(step == 0)
    def _():
        out_ref[...] = jnp.zeros_like(out_ref)

    # Cast inside the kernel (no-op for f32; halves HBM bytes for bf16 inputs).
    mu = mu_ref[...].astype(jnp.float32)
    std = std_ref[...].astype(jnp.float32) * 0.1 + 1e-8
    tl = tl_ref[...].astype(jnp.float32)

    numerator = jnp.abs(mu - tl)
    # EUP reciprocal + one Newton-Raphson refinement instead of a full VALU
    # divide (precision ~1e-6 relative, well inside the test tolerance).
    inv = pl.reciprocal(std, approx=True)
    inv = inv * (2.0 - std * inv)
    # Constants (C*log(2*pi)/2 + log(2)) are folded in once in the wrapper.
    loss = jnp.log(std) + numerator * inv

    # Unclamped logical row base of this tile (duplicate tiles for the second
    # core map past the valid range and therefore mask to zero).
    row_base = (core * tiles_per_core + step) * block_rows
    clean = row_base + block_rows <= rows_full   # tile fully inside valid data

    @pl.when(clean)
    def _():  # steady-state fast path: no iota / compare / select
        out_ref[...] += loss.reshape(-1, SUBLANES, LANES).sum(axis=0)

    @pl.when(jnp.logical_not(clean))
    def _():  # boundary / duplicate tile only
        row_ids = row_base + jax.lax.broadcasted_iota(jnp.int32, loss.shape, 0)
        keep = row_ids < rows_full
        if rem_lanes:  # partial last row (total % 128 != 0)
            lane_ids = jax.lax.broadcasted_iota(jnp.int32, loss.shape, 1)
            keep = keep | ((row_ids == rows_full) & (lane_ids < rem_lanes))
        masked = jnp.where(keep, loss, 0.0)
        out_ref[...] += masked.reshape(-1, SUBLANES, LANES).sum(axis=0)


def disloss(mu, std, tl, *, tile_rows=8192, num_cores=None):
    """Pallas implementation of disloss.forward(mu, std, tl) -> scalar."""
    assert mu.shape == std.shape == tl.shape
    C = mu.shape[1]                      # mu.shape[1] in the PyTorch code
    const_term = np.float32(C * np.log(2.0 * math.pi) / 2.0 + np.log(2.0))

    total = int(np.prod(mu.shape))
    if num_cores is None:
        num_cores = 1 if _single_tc_chip() else 2

    rows_full, rem_lanes = divmod(total, LANES)   # full lane-rows / partial tail
    valid_rows = rows_full + (1 if rem_lanes else 0)

    if rem_lanes == 0 and rows_full >= SUBLANES:
        # Common case: pure reshape (bitcast), zero extra HBM traffic.
        R = rows_full
        mu2 = mu.reshape(R, LANES)
        std2 = std.reshape(R, LANES)
        tl2 = tl.reshape(R, LANES)
    else:
        # Rare lane-unaligned case: minimal pad to the next (8,128) slab.
        # TODO(synk): a fully pad-free ragged path would need manual 1-D DMA.
        R = max(SUBLANES, _round_up(valid_rows, SUBLANES))
        pad = R * LANES - total
        mu2 = jnp.pad(mu.reshape(-1), (0, pad)).reshape(R, LANES)
        std2 = jnp.pad(std.reshape(-1), (0, pad), constant_values=1.0).reshape(R, LANES)
        tl2 = jnp.pad(tl.reshape(-1), (0, pad)).reshape(R, LANES)

    # Pick the block size: user tile, shrunk for small problems, multiple of 8,
    # never larger than the array's row extent.
    tile_rows = max(SUBLANES, (int(tile_rows) // SUBLANES) * SUBLANES)
    per_core_rows = _round_up(-(-valid_rows // num_cores), SUBLANES)
    block_rows = max(SUBLANES,
                     min(tile_rows, per_core_rows, (R // SUBLANES) * SUBLANES))

    tiles_total = -(-valid_rows // block_rows)
    tiles_per_core = -(-tiles_total // num_cores)
    has_dup = num_cores * tiles_per_core > tiles_total

    def in_index(c, i):
        t = c * tiles_per_core + i
        if has_dup:  # clamp duplicate tiles of the last core onto a valid block
            t = jnp.minimum(t, tiles_total - 1)
        return (t, 0)

    in_spec = pl.BlockSpec((block_rows, LANES), in_index)
    out_spec = pl.BlockSpec((SUBLANES, LANES), lambda c, i: (c, 0))

    itemsize = max(jnp.dtype(a.dtype).itemsize for a in (mu2, std2, tl2))
    block_bytes = block_rows * LANES * itemsize
    # 3 inputs x 2 pipeline buffers x block, plus headroom; at least the 32 MiB
    # default, raised past v5e's 16 MiB scoped default for large tiles.
    vmem_limit = int(min(96 * 2**20, max(32 * 2**20, 3 * 2 * block_bytes + 8 * 2**20)))

    partials = pl.pallas_call(
        functools.partial(_disloss_kernel,
                          block_rows=block_rows,
                          tiles_per_core=tiles_per_core,
                          rows_full=rows_full,
                          rem_lanes=rem_lanes),
        out_shape=jax.ShapeDtypeStruct((num_cores * SUBLANES, LANES), jnp.float32),
        grid_spec=pltpu.PrefetchScalarGridSpec(
            num_scalar_prefetch=0,
            grid=(num_cores, tiles_per_core),
            in_specs=[in_spec, in_spec, in_spec],
            out_specs=out_spec,
        ),
        compiler_params=pltpu.CompilerParams(
            dimension_semantics=("parallel", "arbitrary"),
            vmem_limit_bytes=vmem_limit,
        ),
    )(mu2, std2, tl2)

    return const_term + jnp.sum(partials) / np.float32(total)


def _ref_disloss(mu, std, tl):
    std = std * 0.1 + 1e-8
    numerator = jnp.abs(mu - tl)
    loss = mu.shape[1] * np.log(2 * math.pi) / 2 + jnp.log(2 * std) + numerator / std
    return loss.mean()


if __name__ == "__main__":
    key = jax.random.PRNGKey(0)
    k1, k2, k3 = jax.random.split(key, 3)

    # Primary test: NCHW, lane-aligned total -> zero-copy path.
    B, C, H, W = 2, 4, 16, 16
    mu = jax.random.normal(k1, (B, C, H, W), dtype=jnp.float32)
    std = jax.random.uniform(k2, (B, C, H, W), dtype=jnp.float32, minval=0.1, maxval=1.0)
    tl = jax.random.normal(k3, (B, C, H, W), dtype=jnp.float32)

    out = jax.block_until_ready(disloss(mu, std, tl))
    ref = _ref_disloss(mu, std, tl)
    np.testing.assert_allclose(np.asarray(out), np.asarray(ref), rtol=1e-4, atol=1e-5)

    # Secondary test: non-128-divisible shape exercises the pad fallback and
    # the boundary-tile (row + lane) masking.
    B2, C2, H2, W2 = 2, 3, 7, 5
    mu_b = jax.random.normal(k1, (B2, C2, H2, W2), dtype=jnp.float32)
    std_b = jax.random.uniform(k2, (B2, C2, H2, W2), dtype=jnp.float32, minval=0.1, maxval=1.0)
    tl_b = jax.random.normal(k3, (B2, C2, H2, W2), dtype=jnp.float32)

    out_b = jax.block_until_ready(disloss(mu_b, std_b, tl_b))
    ref_b = _ref_disloss(mu_b, std_b, tl_b)
    np.testing.assert_allclose(np.asarray(out_b), np.asarray(ref_b), rtol=1e-4, atol=1e-5)

    print("KERNEL_OK")
</pallas_src>

<mosaic_0001>
module attributes {stable_mosaic.version = 11 : i64} {
  func.func @_disloss_kernel(%arg0: i32, %arg1: i32, %arg2: memref<8x128xf32, #tpu.memory_space<vmem>>, %arg3: memref<8x128xf32, #tpu.memory_space<vmem>>, %arg4: memref<8x128xf32, #tpu.memory_space<vmem>>, %arg5: memref<8x128xf32, #tpu.memory_space<vmem>>) attributes {dimension_semantics = [#tpu.dimension_semantics<parallel>, #tpu.dimension_semantics<arbitrary>], iteration_bounds = array<i64: 2, 1>, scalar_prefetch = 0 : i64, scratch_operands = 0 : i64, tpu.core_type = #tpu.core_type<tc>, window_params = [{transform_indices = @transform_0, window_bounds = array<i64: 8, 128>}, {transform_indices = @transform_1, window_bounds = array<i64: 8, 128>}, {transform_indices = @transform_2, window_bounds = array<i64: 8, 128>}, {transform_indices = @transform_3, window_bounds = array<i64: 8, 128>}]} {
    %c0_i32 = arith.constant 0 : i32
    %0 = arith.cmpi eq, %arg1, %c0_i32 : i32
    %1 = arith.extui %0 : i1 to i32
    %c0_i32_0 = arith.constant 0 : i32
    %2 = arith.cmpi ne, %1, %c0_i32_0 : i32
    scf.if %2 {
      %cst_11 = arith.constant 0.000000e+00 : f32
      %30 = vector.broadcast %cst_11 : f32 to vector<8x128xf32>
      %c0_12 = arith.constant 0 : index
      %c0_13 = arith.constant 0 : index
      %31 = vector.load %arg5[%c0_12, %c0_13] : memref<8x128xf32, #tpu.memory_space<vmem>>, vector<8x128xf32>
      tpu.vector_store %arg5[%c0_12, %c0_13], %30 {strides = array<i32>} : memref<8x128xf32, #tpu.memory_space<vmem>>, vector<8x128xf32>,
    } else {
    }
    %c0 = arith.constant 0 : index
    %c0_1 = arith.constant 0 : index
    %3 = vector.load %arg2[%c0, %c0_1] : memref<8x128xf32, #tpu.memory_space<vmem>>, vector<8x128xf32>
    %c0_2 = arith.constant 0 : index
    %c0_3 = arith.constant 0 : index
    %4 = vector.load %arg3[%c0_2, %c0_3] : memref<8x128xf32, #tpu.memory_space<vmem>>, vector<8x128xf32>
    %cst = arith.constant 1.000000e-01 : f32
    %5 = vector.broadcast %cst : f32 to vector<8x128xf32>
    %6 = arith.mulf %4, %5 : vector<8x128xf32>
    %cst_4 = arith.constant 9.99999993E-9 : f32
    %7 = vector.broadcast %cst_4 : f32 to vector<8x128xf32>
    %8 = arith.addf %6, %7 : vector<8x128xf32>
    %c0_5 = arith.constant 0 : index
    %c0_6 = arith.constant 0 : index
    %9 = vector.load %arg4[%c0_5, %c0_6] : memref<8x128xf32, #tpu.memory_space<vmem>>, vector<8x128xf32>
    %10 = arith.subf %3, %9 : vector<8x128xf32>
    %11 = math.absf %10 : vector<8x128xf32>
    %12 = tpu.reciprocal %8 {approx = true} : vector<8x128xf32> -> vector<8x128xf32>
    %13 = arith.mulf %8, %12 : vector<8x128xf32>
    %cst_7 = arith.constant 2.000000e+00 : f32
    %14 = vector.broadcast %cst_7 : f32 to vector<8x128xf32>
    %15 = arith.subf %14, %13 : vector<8x128xf32>
    %16 = arith.mulf %12, %15 : vector<8x128xf32>
    %17 = math.log %8 : vector<8x128xf32>
    %18 = arith.mulf %11, %16 : vector<8x128xf32>
    %19 = arith.addf %17, %18 : vector<8x128xf32>
    %c1_i32 = arith.constant 1 : i32
    %20 = arith.muli %arg0, %c1_i32 : i32
    %21 = arith.addi %20, %arg1 : i32
    %c8_i32 = arith.constant 8 : i32
    %22 = arith.muli %21, %c8_i32 : i32
    %c8_i32_8 = arith.constant 8 : i32
    %23 = arith.addi %22, %c8_i32_8 : i32
    %c16_i32 = arith.constant 16 : i32
    %24 = arith.cmpi sle, %23, %c16_i32 : i32
    %25 = arith.extui %24 : i1 to i32
    %c0_i32_9 = arith.constant 0 : i32
    %26 = arith.cmpi ne, %25, %c0_i32_9 : i32
    scf.if %26 {
      %c0_11 = arith.constant 0 : index
      %c0_12 = arith.constant 0 : index
      %30 = vector.load %arg5[%c0_11, %c0_12] : memref<8x128xf32, #tpu.memory_space<vmem>>, vector<8x128xf32>
      %31 = vector.shape_cast %19 : vector<8x128xf32> to vector<1x8x128xf32>
      %cst_13 = arith.constant dense<0.000000e+00> : vector<8x128xf32>
      %32 = vector.multi_reduction <add>, %31, %cst_13 [0] : vector<1x8x128xf32> to vector<8x128xf32>
      %33 = arith.addf %30, %32 : vector<8x128xf32>
      %c0_14 = arith.constant 0 : index
      %c0_15 = arith.constant 0 : index
      %34 = vector.load %arg5[%c0_14, %c0_15] : memref<8x128xf32, #tpu.memory_space<vmem>>, vector<8x128xf32>
      tpu.vector_store %arg5[%c0_14, %c0_15], %33 {strides = array<i32>} : memref<8x128xf32, #tpu.memory_space<vmem>>, vector<8x128xf32>,
    } else {
    }
    %true = arith.constant true
    %27 = arith.xori %24, %true : i1
    %28 = arith.extui %27 : i1 to i32
    %c0_i32_10 = arith.constant 0 : i32
    %29 = arith.cmpi ne, %28, %c0_i32_10 : i32
    scf.if %29 {
      %30 = tpu.iota {dimensions = array<i32: 0>} : vector<8x128xi32>
      %31 = vector.broadcast %22 : i32 to vector<8x128xi32>
      %32 = arith.addi %31, %30 : vector<8x128xi32>
      %c16_i32_11 = arith.constant 16 : i32
      %33 = vector.broadcast %c16_i32_11 : i32 to vector<8x128xi32>
      %34 = arith.cmpi slt, %32, %33 : vector<8x128xi32>
      %cst_12 = arith.constant 0.000000e+00 : f32
      %35 = vector.broadcast %cst_12 : f32 to vector<8x128xf32>
      %36 = arith.select %34, %19, %35 : vector<8x128xi1>, vector<8x128xf32>
      %c0_13 = arith.constant 0 : index
      %c0_14 = arith.constant 0 : index
      %37 = vector.load %arg5[%c0_13, %c0_14] : memref<8x128xf32, #tpu.memory_space<vmem>>, vector<8x128xf32>
      %38 = vector.shape_cast %36 : vector<8x128xf32> to vector<1x8x128xf32>
      %cst_15 = arith.constant dense<0.000000e+00> : vector<8x128xf32>
      %39 = vector.multi_reduction <add>, %38, %cst_15 [0] : vector<1x8x128xf32> to vector<8x128xf32>
      %40 = arith.addf %37, %39 : vector<8x128xf32>
      %c0_16 = arith.constant 0 : index
      %c0_17 = arith.constant 0 : index
      %41 = vector.load %arg5[%c0_16, %c0_17] : memref<8x128xf32, #tpu.memory_space<vmem>>, vector<8x128xf32>
      tpu.vector_store %arg5[%c0_16, %c0_17], %40 {strides = array<i32>} : memref<8x128xf32, #tpu.memory_space<vmem>>, vector<8x128xf32>,
    } else {
    }
    return
  }
  func.func @transform_0(%arg0: i32, %arg1: i32) -> (i32, i32) {
    %c1_i32 = arith.constant 1 : i32
    %0 = arith.muli %arg0, %c1_i32 : i32
    %1 = arith.addi %0, %arg1 : i32
    %c0_i32 = arith.constant 0 : i32
    %c0_i32_0 = arith.constant 0 : i32
    return %1, %c0_i32 : i32, i32
  }
  func.func @transform_1(%arg0: i32, %arg1: i32) -> (i32, i32) {
    %c1_i32 = arith.constant 1 : i32
    %0 = arith.muli %arg0, %c1_i32 : i32
    %1 = arith.addi %0, %arg1 : i32
    %c0_i32 = arith.constant 0 : i32
    %c0_i32_0 = arith.constant 0 : i32
    return %1, %c0_i32 : i32, i32
  }
  func.func @transform_2(%arg0: i32, %arg1: i32) -> (i32, i32) {
    %c1_i32 = arith.constant 1 : i32
    %0 = arith.muli %arg0, %c1_i32 : i32
    %1 = arith.addi %0, %arg1 : i32
    %c0_i32 = arith.constant 0 : i32
    %c0_i32_0 = arith.constant 0 : i32
    return %1, %c0_i32 : i32, i32
  }
  func.func @transform_3(%arg0: i32, %arg1: i32) -> (i32, i32) {
    %c0_i32 = arith.constant 0 : i32
    %c0_i32_0 = arith.constant 0 : i32
    return %arg0, %c0_i32 : i32, i32
  }
}

</mosaic_0001>

<bundles_post_ra>
// kernel: tpu_custom_call.1
= control target key start
LH: loop header
LB: loop body
LE: loop exit
PB: predicated region body
PF: predicated region fallthrough
CT: control target
= control target key end

     0   :  { %s935_s0 = inlined_call_operand.hbm [shape: f32[16,128], index: 0, kind: input, shape index: {}]   ;;  %s936_s1 = inlined_call_operand.hbm [shape: f32[16,128], index: 1, kind: input, shape index: {}]   ;;  %s937_s2 = inlined_call_operand.hbm [shape: f32[16,128], index: 2, kind: input, shape index: {}]   ;;  %s938_s3 = inlined_call_operand.hbm [shape: f32[16,128], index: 3, kind: output, shape index: {}]  }
   0x1   :  { %941 = sst [smem:[#allocation15_spill]] %s936_s1 }
   0x2   :  { %8 = vsyncpa [#allocation3], 0 }
   0x3   :  { %10 = vsyncpa [#allocation3 + $0x1], 0 }
   0x4   :  { %11 = vsyncpa [#allocation6], 0 }
   0x5   :  { %13 = vsyncpa [#allocation6 + $0x1], 0 }
   0x6   :  { %14 = vsyncpa [#allocation4], 0 }
   0x7   :  { %16 = vsyncpa [#allocation4 + $0x1], 0  ;;  %s770_s12 = smov 0   ;;  %s772_s13 = smov 0  }
   0x8   :  { %s774_s14 = smov 0   ;;  %s776_s15 = smov 0  }
   0x9   :  { %s778_s16 = smov 0   ;;  %s780_s17 = smov 0  }
   0xa LB: > { %942 = sst [smem:[#allocation12_spill]] %s743_s16  ;;  %s801_s18 = sadd.s32 4294967295, %s747_s17   ;;  %s747_s17 = sphi %s780_s17, %s22_s17   ;;  %s743_s16 = sphi %s778_s16, %s958_s16   ;;  %s739_s15 = sphi %s776_s15, %s953_s15   ;;  %s735_s14 = sphi %s774_s14, %s957_s14   ;;  %s731_s13 = sphi %s772_s13, %s956_s13   ;;  %s727_s12 = sphi %s770_s12, %s955_s12  }
   0xb   : > { %s473_s19 = sadd.s32 4294967294, %s747_s17   ;;  %s34_s20 = sadd.s32 1, %s743_s16 }
   0xc   : > { %s43_s21 = sadd.s32 1, %s735_s14  ;;  %p36_p0 = scmp.ge.s32.totalorder %s34_s20, 2 }
   0xd   : > { %p50_p1 = scmp.ne.s32.totalorder %s735_s14, %s731_s13  ;;  %p51_p2 = scmp.eq.s32.totalorder %s747_s17, 0 }
   0xe   : > { %p56_p3 = scmp.ne.s32.totalorder %s731_s13, %s727_s12  ;;  %s960_s20 = smov (%p36_p0, %s34_s20), 0 }
   0xf   : > { %943 = sst [smem:[#allocation13_spill]] %s960_s20  ;;  %p813_p4 = por %p51_p2, %p50_p1 }
  0x10   : > { %p57_p5 = scmp.eq.s32.totalorder %s801_s18, 0  ;;  %s40_s23 = ssub.s32 %s743_s16, %s960_s20 }
  0x11   : > { %p136_p6 = scmp.eq.s32.totalorder %s801_s18, 1  ;;  %p41_p7 = scmp.eq.s32.totalorder %s40_s23, 0 }
  0x12   : > { %p821_p8 = por %p57_p5, %p56_p3  ;;  %p142_p10 = scmp.eq.s32.totalorder %s473_s19, 1 }
  0x13   : > { %p825_p9 = por %p136_p6, %p50_p1  ;;  %p475_p12 = scmp.ge.s32.totalorder %s747_s17, 2 }
  0x14   : > { %s830_s26 = scalar_select %p41_p7, %s735_s14, %s43_s21  }
  0x15   : > { %p832_p11 = por %p142_p10, %p56_p3  ;;  %p516_p13 = scmp.lt.s32.totalorder %s747_s17, 2 }
  0x16   : > { %947 = sst [smem:[#allocation14_spill]] %s830_s26  ;;  %s162_s28 = sand.u32 1, %s735_s14  }
  0x17   : > { %s476_s29 = sshll.u32 %s162_s28, 3  ;;  %s477_s30 = sshll.u32 %s743_s16, 3 }
  0x18   : > { %p842_p0 = pnand %p516_p13, %p813_p4  ;;  %s182_s5 = sand.u32 1, %s747_s17  }
  0x19   : > { %s950_s1 = sld [smem:[#allocation15_spill]]  ;;  %s186_s10 = scalar_lea.vmem [#allocation5], %s476_s29 }
  0x1a   : > { %s195_s11 = sshll.u32 %s186_s10, 4  ;;  %s183_s19 = scalar_lea.sflag [#allocation6], %s182_s5  ;;  %s196_s11 = int_to_ptr.vmem [resolvable:$true] %s195_s11 }
  0x1b   : > { %p482_p1 = scmp.ge.s32.totalorder %s747_s17, 1  ;;  %p220_p2 = scmp.lt.s32.totalorder %s747_s17, 3 }
  0x1c   : > { %s171_s6 = scalar_lea.hbm %s935_s0, %s477_s30  ;;  %s163_s10 = scalar_lea.sflag [#allocation3], %s162_s28 }
  0x1d   : > { %p854_p3 = pnand %p482_p1, %p220_p2  ;;  %s173_s7 = sshll.u32 %s171_s6, 4  ;;  %s174_s7 = int_to_ptr.hbm [resolvable:$true] %s173_s7 }
  0x1e   : > { %s206_s16 = scalar_lea.vmem [#allocation7], %s476_s29  ;;  %s871_s22 = sand.u32 (!%p854_p3), 1, %s731_s13  }
  0x1f   : > { %s191_s8 = scalar_lea.hbm %s950_s1, %s477_s30  ;;  %s215_s26 = sshll.u32 %s206_s16, 4  ;;  %s216_s26 = int_to_ptr.vmem [resolvable:$true] %s215_s26 }
  0x20   : > { %s193_s9 = sshll.u32 %s191_s8, 4  ;;  %s166_s8 = scalar_lea.vmem [#allocation2], %s476_s29  ;;  %s194_s9 = int_to_ptr.hbm [resolvable:$true] %s193_s9 }
  0x21   : > { %508 = dma.hbm_to_vmem [thread:$0]  (!%p842_p0), %s194_s9, 128, %s196_s11, %s183_s19  }
  0x22   : > { %s175_s1 = sshll.u32 %s166_s8, 4  ;;  %s211_s11 = scalar_lea.hbm %s937_s2, %s477_s30  ;;  %s176_s1 = int_to_ptr.vmem [resolvable:$true] %s175_s1 }
  0x23   : > { %505 = dma.hbm_to_vmem [thread:$0]  (!%p842_p0), %s174_s7, 128, %s176_s1, %s163_s10  }
  0x24   : > { %s213_s20 = sshll.u32 %s211_s11, 4  ;;  %224 = sbr.rel (%p854_p3) target bundleno = 102 (0x66), region = 32  ;;  %s214_s20 = int_to_ptr.hbm [resolvable:$true] %s213_s20 }
  0x25   : > { %511 = dma.hbm_to_vmem [thread:$0]  (!%p842_p0), %s214_s20, 128, %s216_s26, %s183_s19  }
  0x26   : > { %s483_s1 = sshll.u32 (!%p854_p3), %s871_s22, 3  ;;  %s227_s28 = scalar_lea.sflag (!%p854_p3), [#allocation3], %s871_s22 }
  0x27   : > { %s230_s23 = scalar_lea.vmem (!%p854_p3), [#allocation2], %s483_s1 }
  0x29   : > { %714 = dma.done.wait (%p821_p8), %s227_s28, 128  }
  0x2a   : > { %716 = vsyncadd (%p821_p8), %s227_s28, 4294967168  ;;  %s236_s16 = sand.u32 1, %s801_s18   ;;  %s240_s26 = scalar_lea.vmem [#allocation5], %s483_s1 }
  0x2b   : > { %s237_s20 = scalar_lea.sflag [#allocation6], %s236_s16 }
  0x2c   : > { %718 = dma.done.wait (%p821_p8), %s237_s20, 256  }
  0x2d   : > { %720 = vsyncadd (%p821_p8), %s237_s20, 4294967040  ;;  %s884_s29 = scalar_lea.vmem [#allocation8], %s483_s1  ;;  %v749_v0 = vmov 0.0   ;;  %s888_s30 = sshll.u32 %s739_s15, 3  ;;  %v293_v1 = vld [vmem:[%s240_s26] sm:$0xff]  ;;  %v292_v4 = vld [vmem:[%s230_s23] sm:$0xff] }
  0x2e   : > { %291 = vst [vmem:[%s884_s29] sm:$0xff] %v749_v0  ;;  %s309_s4 = sadd.s32 8, %s888_s30  ;;  %v294_v2 = vmul.f32 0.1, %v293_v1  ;;  %s250_s18 = scalar_lea.vmem [#allocation7], %s483_s1 }
  0x2f   : > { %v296_v5 = vld [vmem:[%s250_s18] sm:$0xff]  ;;  %p488_p4 = scmp.gt.s32.totalorder %s309_s4, 16 }
  0x30   : > { %v295_v3 = vadd.f32 1e-08, %v294_v2  ;;  %v297_v6 = vsub.f32 %v292_v4, %v296_v5 }
  0x32   : > { %567 = vrcp.f32 %v295_v3  ;;  %v298_v10 = vand.u32 2147483647, %v297_v6 }
  0x33   : > { %569 = vlog2.f32 %v295_v3 }
  0x38   : > { %v568_v7 = vpop.eup %567 }
  0x39   : > { %v300_v8 = vmul.f32 %v568_v7, %v295_v3  ;;  %v570_v9 = vpop.eup %569 }
  0x3a   : > { %v304_v13 = vmul.f32 0.6931472, %v570_v9 }
  0x3b   : > { %v301_v11 = vsub.f32 2.0, %v300_v8 }
  0x3d   : > { %v302_v12 = vmul.f32 %v568_v7, %v301_v11  ;;  %313 = sbr.rel (%p488_p4) target bundleno = 70 (0x46), region = 52 }
  0x3f   : > { %v305_v14 = vmul.f32 %v302_v12, %v298_v10 }
  0x41   : > { %v306_v15 = vadd.f32 %v305_v14, %v304_v13 }
  0x42   : > { %v314_v16 = vld [vmem:[%s884_s29] sm:$0xff] }
  0x43   : > { %v316_v17 = vadd.f32 %v314_v16, %v306_v15 }
  0x45   : > { %317 = vst [vmem:[%s884_s29] sm:$0xff] %v316_v17 }
  0x46 PF: > { %p489_p5 = scmp.le.s32.totalorder %s309_s4, 16 }
  0x48   : > { %321 = sbr.rel (%p489_p5) target bundleno = 88 (0x58), region = 56 }
  0x4d   : > { %v322_v18 = vlaneseq  ;;  %v324_v19 = vstv %s888_s30  ;;  %v328_v22 = vld [vmem:[%s884_s29] sm:$0xff] }
  0x4f   : > { %v323_v20 = vshrl.u32 %v322_v18, 7 }
  0x51   : > { %v325_v21 = vadd.s32 %v324_v19, %v323_v20 }
  0x53   : > { %vm326_vm0 = vcmp.lt.s32.totalorder %v325_v21, 16 }
  0x54   : > { %v327_v23 = vsel %vm326_vm0, %v306_v15, 0.0 }
  0x55   : > { %v330_v24 = vadd.f32 %v328_v22, %v327_v23 }
  0x57   : > { %331 = vst [vmem:[%s884_s29] sm:$0xff] %v330_v24 }
  0x58 PF: > { %s343_s19 = scalar_lea.hbm %s938_s3, %s888_s30  ;;  %s345_s21 = sshll.u32 %s884_s29, 4  ;;  %s346_s21 = int_to_ptr.vmem [resolvable:$true] %s345_s21 }
  0x59   : > { %s347_s6 = sshll.u32 %s343_s19, 4  ;;  %s333_s7 = scalar_lea.sflag [#allocation4], %s871_s22  ;;  %s348_s6 = int_to_ptr.hbm [resolvable:$true] %s347_s6 }
  0x5a   : > { %s675_s8 = sshra.s32 %s348_s6, 4  ;;  %s681_s11 = scalar_lea.hbm %s938_s3, 16  ;;  %s676_s8 = int_to_ptr.hbm [resolvable:$true] %s675_s8 }
  0x5b   : > { %s677_s10 = scalar_lea.hbm %s676_s8, 8  ;;  %p682_p10 = scmp.lt.s32.totalorder %s676_s8, %s938_s3 }
  0x5c   : > { %p678_p6 = scmp.ne.s32.totalorder %s676_s8, %s677_s10  ;;  %p683_p13 = scmp.lt.s32.totalorder %s681_s11, %s677_s10 }
  0x5e   : > { %p679_p7 = pnand %p678_p6, %p825_p9  ;;  %p684_p0 = por %p683_p13, %p682_p10 }
  0x60   : > { %p680_p8 = pneg %p679_p7 }
  0x62   : > { %p685_p1 = pnand %p684_p0, %p680_p8 }
  0x64   : > { %688 = shalt.err (!%p685_p1)
}
  0x65   : > { %500 = dma.vmem_to_hbm [thread:$0]  (%p825_p9), %s346_s21, 128, %s348_s6, %s333_s7  }
  0x66 PF: > { %s359_s22 = sand.u32 1, %s727_s12   ;;  %p513_p2 = pnand %p475_p12, %p832_p11 }
  0x67   : > { %s360_s23 = scalar_lea.sflag [#allocation4], %s359_s22 }
  0x68   : > { %p514_p3 = pneg %p513_p2 }
  0x6a   : > { %722 = dma.done.wait (%p514_p3), %s360_s23, 128  }
  0x6b   : > { %724 = vsyncadd (%p514_p3), %s360_s23, 4294967168  ;;  %s22_s17 = sadd.s32 1, %s747_s17   ;;  %s952_s16 = sld [smem:[#allocation14_spill]] }
  0x6c   : > { %p19_p4 = scmp.ge.s32.totalorder %s22_s17, 4   ;;  %s953_s15 = sld [smem:[#allocation12_spill]] }
  0x6d   : > { %s954_s25 = sld [smem:[#allocation13_spill]]  ;;  %s955_s12 = smov %s731_s13 }
  0x6e   : > { %s956_s13 = smov %s735_s14 }
  0x6f   :  { %21 = sbr.rel (!%p19_p4) target bundleno = 10 (0xa), region = 113 }
  0x71   : > { %s957_s14 = smov %s952_s16 }
  0x73   : > { %s958_s16 = smov %s954_s25 }
  0x74   :  { %366 = vsyncpa [#allocation3], 1 }
  0x75   :  { %368 = vsyncpa [#allocation3 + $0x1], 1 }
  0x76   :  { %369 = vsyncpa [#allocation6], 1 }
  0x77   :  { %371 = vsyncpa [#allocation6 + $0x1], 1 }
  0x78   :  { %372 = vsyncpa [#allocation4], 1 }
  0x79   :  { %374 = vsyncpa [#allocation4 + $0x1], 1 }

</bundles_post_ra>
